<compile_context>
chip_gen: v6e
topology: v6e:2x2x1
jax: 0.10.0
libtpu: 0.0.40
codegen_flags: <defaults>
</compile_context>

<pallas_src>
import jax
import jax.numpy as jnp
from jax.experimental import pallas as pl
from jax.experimental.pallas import tpu as pltpu


# ---------------------------------------------------------------------------
# Kernel: one (step-block, batch-block) grid cell.
# ---------------------------------------------------------------------------
def _seq_steps_kernel(x_ref, w_ref, t_ref, d_ref, feat_ref, reg_ref):
    # x_ref    : (TB, D_in)      compute dtype
    # w_ref    : (D_in, NT)      compute dtype (NT columns of the repacked W)
    # t_ref    : (1, NT)         f32 targets
    # d_ref    : (1, NT)         f32 deltas
    # feat_ref : (1, 1, 8, 128)  f32 per-lane partial SSE (dense, unmasked store)
    # reg_ref  : (1, 1, 1, 128)  f32 per-lane partial sum(|delta|)
    x = x_ref[...]
    w = w_ref[...]
    t = t_ref[...]
    d = d_ref[...]

    # Single wide-N MXU matmul with f32 accumulation.
    y = jnp.dot(x, w, preferred_element_type=jnp.float32)      # (TB, NT)
    diff = y - t
    sq = diff * diff

    tb, nt = sq.shape
    # Lane-dense partial: fold batch rows into 8 sublane groups and the wide-N
    # columns into lane groups -> (8,128) tile, no full cross-lane reduce.
    sq_b = sq.reshape(tb // 8, 8, nt).sum(axis=0)               # (8, NT)
    feat_ref[...] = sq_b.reshape(8, nt // 128, 128).sum(axis=1)[None, None]

    # reg partial is batch-independent; written once per batch block, the
    # wrapper divides by the number of batch blocks.
    reg_lane = jnp.abs(d).reshape(nt // 128, 128).sum(axis=0)   # (128,)
    reg_ref[...] = reg_lane.reshape(1, 1, 1, 128)


# ---------------------------------------------------------------------------
# Tile planning (generation-aware VMEM budget).
# ---------------------------------------------------------------------------
def _vmem_capacity_bytes():
    try:
        info = pltpu.get_tpu_info()
        cap = getattr(info, "vmem_capacity_bytes", None)
        if cap:
            return int(cap)
    except Exception:
        pass
    return 64 * 1024 * 1024   # v7x physical VMEM: smallest across generations


def _prefer_multiple_blocks():
    # v7x has 2 TensorCores per chip -> guarantee >= 2 parallel grid blocks.
    # On 1-TC chips (v5e/v6e) keep blocks maximal (each grid step ~0.35 us).
    try:
        kind = jax.devices()[0].device_kind.lower()
        return ("v7" in kind) or ("7x" in kind)
    except Exception:
        return False


def _tile_need_bytes(tb, nt, d_in, itemsize):
    dbl = 2 * (d_in * nt * itemsize          # W tile (double-buffered)
               + tb * d_in * itemsize        # x tile
               + 2 * nt * 4                  # targets + deltas tiles
               + (8 * 128 + 128) * 4)        # feat + reg output tiles
    interm = 2 * tb * nt * 4                 # f32 y and diff/sq intermediates
    return dbl + interm


def _plan_tiles(B, d_in, n_total, itemsize, budget, prefer_multi):
    assert B % 8 == 0, "batch must be a multiple of 8 (sublane packing)"
    assert n_total % 128 == 0, "S*D_out must be a multiple of 128 (lane packing)"
    # TODO(synk): ragged batch / non-128-multiple D_out would need zero-padding
    #             of the wide-N axis + a wrapper correction; not needed here.
    nt_cands = sorted([c for c in range(128, n_total + 1, 128) if n_total % c == 0],
                      reverse=True)
    tb_cands = sorted([c for c in range(8, min(B, 256) + 1, 8) if B % c == 0],
                      reverse=True)
    tb_min = tb_cands[-1]
    assert _tile_need_bytes(tb_min, nt_cands[-1], d_in, itemsize) <= budget, (
        "even the smallest tile exceeds the VMEM budget; a K (D_in) sub-tiling "
        "grid axis with an accumulator would be required")
    # TODO(synk): add K sub-tiling if the assert above ever triggers.

    # Largest wide-N tile that fits (W is the dominant stream), then the
    # largest batch tile that still fits with it.
    nt = next(c for c in nt_cands if _tile_need_bytes(tb_min, c, d_in, itemsize) <= budget)
    tb = next(c for c in tb_cands if _tile_need_bytes(c, nt, d_in, itemsize) <= budget)

    # v7x megacore: split the wide-N axis if everything collapsed to one block.
    if prefer_multi and (n_total // nt) * (B // tb) == 1:
        smaller = [c for c in nt_cands if c < nt]
        if smaller:
            nt = smaller[0]
    return tb, nt


# ---------------------------------------------------------------------------
# Wrappers
# ---------------------------------------------------------------------------
def pack_seq_steps_params(weights, targets, deltas, compute_dtype=jnp.bfloat16):
    """One-time repack — hoist out of the hot path.  Casting to the compute
    dtype BEFORE the transpose/reshape halves the repack HBM traffic."""
    S, d_in, d_out = weights.shape
    w_wide = jnp.transpose(weights.astype(compute_dtype), (1, 0, 2)).reshape(d_in, S * d_out)
    t_wide = targets.reshape(1, S * d_out).astype(jnp.float32)
    d_wide = deltas.reshape(1, S * d_out).astype(jnp.float32)
    return w_wide, t_wide, d_wide


def seq_steps_forward_packed(x, w_wide, t_wide, d_wide, *, d_out,
                             compute_dtype=jnp.bfloat16):
    """Hot-path entry point.  Returns (sum of feat_losses, sum of reg_losses).

    NOTE: compute_dtype=bfloat16 changes x@W numerics (loose tolerance); pass
    compute_dtype=float32 for exact parity with the f32 PyTorch module.
    Per-step mean assumes every step has the same D_out (true for the
    (S, D_in, D_out) weight stack this wrapper accepts).
    """
    B, d_in = x.shape
    n_total = w_wide.shape[1]
    itemsize = jnp.dtype(compute_dtype).itemsize

    capacity = _vmem_capacity_bytes()
    budget = capacity // 2
    tb, nt = _plan_tiles(B, d_in, n_total, itemsize, budget, _prefer_multiple_blocks())
    ns, nb = n_total // nt, B // tb
    need = _tile_need_bytes(tb, nt, d_in, itemsize)
    vmem_limit = int(min(capacity * 9 // 10, max(32 * 1024 * 1024, 2 * need)))

    x_c = x.astype(compute_dtype)
    w_c = w_wide.astype(compute_dtype)   # no-op when pre-packed in compute_dtype

    cost = pl.CostEstimate(
        flops=2 * B * d_in * n_total,
        transcendentals=0,
        bytes_accessed=(d_in * n_total * itemsize           # W read once (batch innermost)
                        + ns * B * d_in * itemsize          # x re-read per step block
                        + 2 * n_total * 4                   # targets + deltas
                        + ns * nb * (8 * 128 + 128) * 4))   # partial outputs

    feat_p, reg_p = pl.pallas_call(
        _seq_steps_kernel,
        out_shape=(jax.ShapeDtypeStruct((ns, nb, 8, 128), jnp.float32),
                   jax.ShapeDtypeStruct((ns, nb, 1, 128), jnp.float32)),
        grid_spec=pltpu.PrefetchScalarGridSpec(
            num_scalar_prefetch=0,
            grid=(ns, nb),   # batch innermost: each W block DMA'd exactly once
            in_specs=[
                pl.BlockSpec((tb, d_in), lambda si, bi: (bi, 0)),   # x (batch-keyed)
                pl.BlockSpec((d_in, nt), lambda si, bi: (0, si)),   # W wide block
                pl.BlockSpec((1, nt), lambda si, bi: (0, si)),      # targets
                pl.BlockSpec((1, nt), lambda si, bi: (0, si)),      # deltas
                # NOTE: if DMA stalls appear with many step blocks, deepen only
                # the W stream via pipeline_mode=pl.Buffered(3) (trades VMEM).
            ],
            out_specs=[
                pl.BlockSpec((1, 1, 8, 128), lambda si, bi: (si, bi, 0, 0)),
                pl.BlockSpec((1, 1, 1, 128), lambda si, bi: (si, bi, 0, 0)),
            ],
        ),
        compiler_params=pltpu.CompilerParams(
            dimension_semantics=("parallel", "parallel"),   # no resident accumulator
            vmem_limit_bytes=vmem_limit,
        ),
        cost_estimate=cost,
    )(x_c, w_c, t_wide, d_wide)

    # sum of per-step means = total SSE / (B * D_out)
    feat_sum = jnp.sum(feat_p) / jnp.float32(B * d_out)
    # each step's |delta| sum was written once per batch block
    reg_sum = jnp.sum(reg_p) / jnp.float32(d_out * nb)
    return feat_sum, reg_sum


def seq_steps_forward(x, weights, targets, deltas, compute_dtype=jnp.bfloat16):
    """Convenience wrapper matching the module signature (packs on the fly).
    Prefer pack_seq_steps_params + seq_steps_forward_packed in a hot loop."""
    d_out = weights.shape[2]
    w_wide, t_wide, d_wide = pack_seq_steps_params(weights, targets, deltas, compute_dtype)
    return seq_steps_forward_packed(x, w_wide, t_wide, d_wide, d_out=d_out,
                                    compute_dtype=compute_dtype)


def _reference(x, weights, targets, deltas):
    feat = jnp.float32(0.0)
    reg = jnp.float32(0.0)
    for s in range(weights.shape[0]):
        y = x @ weights[s]
        feat = feat + jnp.mean((y - targets[s][None, :]) ** 2)
        reg = reg + jnp.mean(jnp.abs(deltas[s]))
    return feat, reg


if __name__ == "__main__":
    key = jax.random.PRNGKey(0)
    k_x, k_w, k_t, k_d = jax.random.split(key, 4)

    B, D_in, D_out, S = 8, 128, 128, 3   # small shapes; 3 sequential steps

    x = jax.random.normal(k_x, (B, D_in), dtype=jnp.float32)
    weights = jax.random.normal(k_w, (S, D_in, D_out), dtype=jnp.float32) * 0.05
    targets = jax.random.normal(k_t, (S, D_out), dtype=jnp.float32)
    deltas = jax.random.normal(k_d, (S, D_out), dtype=jnp.float32) * 0.1

    ref_feat, ref_reg = _reference(x, weights, targets, deltas)

    # Exact-semantics path: f32 streaming, weights pre-packed ONCE outside the hot path.
    w32, t32, d32 = pack_seq_steps_params(weights, targets, deltas, jnp.float32)
    jax.block_until_ready((w32, t32, d32))
    feat32, reg32 = seq_steps_forward_packed(x, w32, t32, d32, d_out=D_out,
                                             compute_dtype=jnp.float32)
    jax.block_until_ready((feat32, reg32))
    assert jnp.allclose(feat32, ref_feat, rtol=1e-5, atol=1e-5)
    assert jnp.allclose(reg32, ref_reg, rtol=1e-5, atol=1e-5)

    # Performance path: bf16 W/x streaming with f32 MXU accumulation (loose tol).
    w16, t16, d16 = pack_seq_steps_params(weights, targets, deltas, jnp.bfloat16)
    jax.block_until_ready((w16, t16, d16))
    feat16, reg16 = seq_steps_forward_packed(x, w16, t16, d16, d_out=D_out,
                                             compute_dtype=jnp.bfloat16)
    jax.block_until_ready((feat16, reg16))
    assert jnp.allclose(feat16, ref_feat, rtol=3e-2, atol=3e-2)
    assert jnp.allclose(reg16, ref_reg, rtol=1e-5, atol=1e-5)

    # Convenience wrapper (API parity with the original module).
    featc, regc = seq_steps_forward(x, weights, targets, deltas)
    jax.block_until_ready((featc, regc))
    assert jnp.allclose(featc, ref_feat, rtol=3e-2, atol=3e-2)

    print("KERNEL_OK")
</pallas_src>

<mosaic_0001>
module attributes {stable_mosaic.version = 11 : i64} {
  func.func @_seq_steps_kernel(%arg0: i32, %arg1: i32, %arg2: memref<8x128xf32, #tpu.memory_space<vmem>>, %arg3: memref<128x384xf32, #tpu.memory_space<vmem>>, %arg4: memref<1x384xf32, #tpu.memory_space<vmem>>, %arg5: memref<1x384xf32, #tpu.memory_space<vmem>>, %arg6: memref<1x1x8x128xf32, #tpu.memory_space<vmem>>, %arg7: memref<1x1x1x128xf32, #tpu.memory_space<vmem>>) attributes {dimension_semantics = [#tpu.dimension_semantics<parallel>, #tpu.dimension_semantics<parallel>], iteration_bounds = array<i64: 1, 1>, scalar_prefetch = 0 : i64, scratch_operands = 0 : i64, tpu.core_type = #tpu.core_type<tc>, window_params = [{transform_indices = @transform_0, window_bounds = array<i64: 8, 128>}, {transform_indices = @transform_1, window_bounds = array<i64: 128, 384>}, {transform_indices = @transform_2, window_bounds = array<i64: 1, 384>}, {transform_indices = @transform_3, window_bounds = array<i64: 1, 384>}, {transform_indices = @transform_4, window_bounds = array<i64: 1, 1, 8, 128>}, {transform_indices = @transform_5, window_bounds = array<i64: 1, 1, 1, 128>}]} {
    %c0 = arith.constant 0 : index
    %c0_0 = arith.constant 0 : index
    %0 = vector.load %arg2[%c0, %c0_0] : memref<8x128xf32, #tpu.memory_space<vmem>>, vector<8x128xf32>
    %c0_1 = arith.constant 0 : index
    %c0_2 = arith.constant 0 : index
    %1 = vector.load %arg3[%c0_1, %c0_2] : memref<128x384xf32, #tpu.memory_space<vmem>>, vector<128x384xf32>
    %c0_3 = arith.constant 0 : index
    %c0_4 = arith.constant 0 : index
    %2 = vector.load %arg4[%c0_3, %c0_4] : memref<1x384xf32, #tpu.memory_space<vmem>>, vector<1x384xf32>
    %c0_5 = arith.constant 0 : index
    %c0_6 = arith.constant 0 : index
    %3 = vector.load %arg5[%c0_5, %c0_6] : memref<1x384xf32, #tpu.memory_space<vmem>>, vector<1x384xf32>
    %cst = arith.constant dense<0.000000e+00> : vector<8x384xf32>
    %4 = tpu.matmul %0, %1, %cst {dimension_numbers = #tpu.dot_dimension_numbers<[1], [0], [0], [1], [0, 0, 1, 1], [], []>} : vector<8x128xf32>, vector<128x384xf32>, vector<8x384xf32> -> vector<8x384xf32>
    %5 = vector.broadcast %2 : vector<1x384xf32> to vector<8x384xf32>
    %6 = arith.subf %4, %5 : vector<8x384xf32>
    %7 = arith.mulf %6, %6 : vector<8x384xf32>
    %8 = vector.shape_cast %7 : vector<8x384xf32> to vector<1x8x384xf32>
    %cst_7 = arith.constant dense<0.000000e+00> : vector<8x384xf32>
    %9 = vector.multi_reduction <add>, %8, %cst_7 [0] : vector<1x8x384xf32> to vector<8x384xf32>
    %10 = vector.shape_cast %9 : vector<8x384xf32> to vector<8x3x128xf32>
    %cst_8 = arith.constant dense<0.000000e+00> : vector<8x128xf32>
    %11 = vector.multi_reduction <add>, %10, %cst_8 [1] : vector<8x3x128xf32> to vector<8x128xf32>
    %12 = vector.shape_cast %11 : vector<8x128xf32> to vector<1x1x8x128xf32>
    %c0_9 = arith.constant 0 : index
    %c0_10 = arith.constant 0 : index
    %c0_11 = arith.constant 0 : index
    %c0_12 = arith.constant 0 : index
    %13 = vector.load %arg6[%c0_9, %c0_10, %c0_11, %c0_12] : memref<1x1x8x128xf32, #tpu.memory_space<vmem>>, vector<1x1x8x128xf32>
    tpu.vector_store %arg6[%c0_9, %c0_10, %c0_11, %c0_12], %12 {strides = array<i32>} : memref<1x1x8x128xf32, #tpu.memory_space<vmem>>, vector<1x1x8x128xf32>,
    %14 = math.absf %3 : vector<1x384xf32>
    %15 = vector.shape_cast %14 : vector<1x384xf32> to vector<3x128xf32>
    %cst_13 = arith.constant dense<0.000000e+00> : vector<128xf32>
    %16 = vector.multi_reduction <add>, %15, %cst_13 [0] : vector<3x128xf32> to vector<128xf32>
    %17 = vector.shape_cast %16 : vector<128xf32> to vector<1x1x1x128xf32>
    %c0_14 = arith.constant 0 : index
    %c0_15 = arith.constant 0 : index
    %c0_16 = arith.constant 0 : index
    %c0_17 = arith.constant 0 : index
    %18 = vector.load %arg7[%c0_14, %c0_15, %c0_16, %c0_17] : memref<1x1x1x128xf32, #tpu.memory_space<vmem>>, vector<1x1x1x128xf32>
    tpu.vector_store %arg7[%c0_14, %c0_15, %c0_16, %c0_17], %17 {strides = array<i32>} : memref<1x1x1x128xf32, #tpu.memory_space<vmem>>, vector<1x1x1x128xf32>,
    return
  }
  func.func @transform_0(%arg0: i32, %arg1: i32) -> (i32, i32) {
    %c0_i32 = arith.constant 0 : i32
    %c0_i32_0 = arith.constant 0 : i32
    return %arg1, %c0_i32 : i32, i32
  }
  func.func @transform_1(%arg0: i32, %arg1: i32) -> (i32, i32) {
    %c0_i32 = arith.constant 0 : i32
    %c0_i32_0 = arith.constant 0 : i32
    return %c0_i32, %arg0 : i32, i32
  }
  func.func @transform_2(%arg0: i32, %arg1: i32) -> (i32, i32) {
    %c0_i32 = arith.constant 0 : i32
    %c0_i32_0 = arith.constant 0 : i32
    return %c0_i32, %arg0 : i32, i32
  }
  func.func @transform_3(%arg0: i32, %arg1: i32) -> (i32, i32) {
    %c0_i32 = arith.constant 0 : i32
    %c0_i32_0 = arith.constant 0 : i32
    return %c0_i32, %arg0 : i32, i32
  }
  func.func @transform_4(%arg0: i32, %arg1: i32) -> (i32, i32, i32, i32) {
    %c0_i32 = arith.constant 0 : i32
    %c0_i32_0 = arith.constant 0 : i32
    %c0_i32_1 = arith.constant 0 : i32
    return %arg0, %arg1, %c0_i32, %c0_i32_0 : i32, i32, i32, i32
  }
  func.func @transform_5(%arg0: i32, %arg1: i32) -> (i32, i32, i32, i32) {
    %c0_i32 = arith.constant 0 : i32
    %c0_i32_0 = arith.constant 0 : i32
    %c0_i32_1 = arith.constant 0 : i32
    return %arg0, %arg1, %c0_i32, %c0_i32_0 : i32, i32, i32, i32
  }
}

</mosaic_0001>

<bundles_post_ra>
// kernel: tpu_custom_call.1
= control target key start
LH: loop header
LB: loop body
LE: loop exit
PB: predicated region body
PF: predicated region fallthrough
CT: control target
= control target key end

     0   :  { %11 = vsyncpa [#allocation3], 0  ;;  %s725_s0 = inlined_call_operand.hbm [shape: f32[8,128], index: 0, kind: input, shape index: {}]   ;;  %s726_s1 = inlined_call_operand.hbm [shape: f32[128,384], index: 1, kind: input, shape index: {}]   ;;  %s727_s2 = inlined_call_operand.vmem [shape: f32[1,384], index: 2, kind: input, shape index: {}]   ;;  %s728_s3 = inlined_call_operand.hbm [shape: f32[1,384], index: 3, kind: input, shape index: {}]   ;;  %s729_s4 = inlined_call_operand.hbm [shape: f32[1,1,8,128], index: 4, kind: output, shape index: {0}]   ;;  %s730_s5 = inlined_call_operand.hbm [shape: f32[1,1,1,128], index: 5, kind: output, shape index: {1}]  }
   0x1   :  { %12 = vsyncpa [#allocation6], 0 }
   0x2   :  { %13 = vsyncpa [#allocation4], 0 }
   0x3   :  { %14 = vsyncpa [#allocation10], 0  ;;  %s633_s18 = smov [#allocation5]  }
   0x4   :  { %s30_s19 = sshll.u32 %s633_s18, 4  ;;  %s31_s19 = int_to_ptr.vmem [resolvable:$true] %s30_s19 }
   0x5   :  { %s533_s20 = scalar_lea.vmem %s31_s19, 6144  ;;  %p538_p1 = scmp.lt.s32.totalorder %s31_s19, %s31_s19 }
   0x6   :  { %p534_p0 = scmp.ne.s32.totalorder %s31_s19, %s533_s20  ;;  %p539_p2 = scmp.lt.s32.totalorder %s533_s20, %s533_s20 }
   0x8   :  { %p540_p3 = por %p539_p2, %p538_p1 }
   0xa   :  { %p541_p4 = pnand %p540_p3, %p534_p0 }
   0xc   :  { %544 = shalt.err (!%p541_p4)
}
   0xd   :  { %s634_s21 = smov 384   ;;  %s635_s22 = smov 24  }
   0xe   :  { %36 = dma.hbm_to_vmem [thread:$0]  %s726_s1, 6144, %s31_s19, [#allocation6], %s634_s21, %s634_s21, %s635_s22  }
   0xf   :  { %s636_s25 = smov [#allocation2]   ;;  %s637_s27 = smov [#allocation7]  }
  0x10   :  { %s21_s26 = sshll.u32 %s636_s25, 4  ;;  %s45_s28 = sshll.u32 %s637_s27, 4  ;;  %s22_s26 = int_to_ptr.vmem [resolvable:$true] %s21_s26  ;;  %s46_s28 = int_to_ptr.vmem [resolvable:$true] %s45_s28 }
  0x11   :  { %s553_s29 = scalar_lea.vmem %s22_s26, 128  ;;  %p558_p6 = scmp.lt.s32.totalorder %s22_s26, %s22_s26 }
  0x12   :  { %p554_p5 = scmp.ne.s32.totalorder %s22_s26, %s553_s29  ;;  %p559_p7 = scmp.lt.s32.totalorder %s553_s29, %s553_s29 }
  0x14   :  { %p560_p8 = por %p559_p7, %p558_p6 }
  0x16   :  { %p561_p9 = pnand %p560_p8, %p554_p5 }
  0x18   :  { %564 = shalt.err (!%p561_p9)
}
  0x19   :  { %24 = dma.hbm_to_vmem [thread:$0]  %s725_s0, 128, %s22_s26, [#allocation3]  }
  0x1a   :  { %s573_s7 = scalar_lea.vmem %s46_s28, 48  ;;  %s577_s1 = scalar_lea.vmem %s46_s28, 64 }
  0x1b   :  { %p574_p10 = scmp.ne.s32.totalorder %s46_s28, %s573_s7  ;;  %p578_p11 = scmp.lt.s32.totalorder %s46_s28, %s46_s28 }
  0x1c   :  { %p579_p12 = scmp.lt.s32.totalorder %s577_s1, %s573_s7 }
  0x1e   :  { %p580_p13 = por %p579_p12, %p578_p11 }
  0x20   :  { %p581_p0 = pnand %p580_p13, %p574_p10 }
  0x22   :  { %584 = shalt.err (!%p581_p0)
}
  0x23   :  { %48 = dma.hbm_to_vmem [thread:$0]  %s728_s3, 48, %s46_s28, [#allocation6]  }
  0x24   :  { %625 = dma.done.wait [#allocation3], 128  }
  0x25   :  { %626 = vsyncadd [#allocation3], 4294967168 }
  0x26   :  { %627 = dma.done.wait [#allocation6], 6192  }
  0x27   :  { %628 = vsyncadd [#allocation6], 4294961104  ;;  %v638_v0 = vmov 0.0   ;;  %vm639_vm0 = vmmov 0   ;;  %v105_v1 = vld [vmem:[#allocation5 + $0x170] sm:$0xff]  ;;  %v106_v2 = vld [vmem:[#allocation5 + $0x178] sm:$0xff] }
  0x28   :  { %479 = vmatprep.subr.mxu1 %v638_v0  ;;  %511 = vmatprep.mubr.msk.f32.mxu1 %vm639_vm0, %v638_v0  ;;  %v104_v3 = vld [vmem:[#allocation5 + $0x168] sm:$0xff]  ;;  %v102_v4 = vld [vmem:[#allocation5 + $0x158] sm:$0xff]  ;;  %v103_v5 = vld [vmem:[#allocation5 + $0x160] sm:$0xff]  ;;  %vm342_vm1 = vcmask 1042432   ;;  %s640_s0 = smov [#allocation9]  }
  0x29   :  { %173 = vmatprep.mubr.f32.mxu0 %v638_v0  ;;  %109 = vmatprep.subr.mxu0 %v105_v1  ;;  %v101_v6 = vld [vmem:[#allocation5 + $0x150] sm:$0xff]  ;;  %v99_v7 = vld [vmem:[#allocation5 + $0x140] sm:$0xff]  ;;  %v100_v8 = vld [vmem:[#allocation5 + $0x148] sm:$0xff]  ;;  %s448_s3 = sshll.u32 %s640_s0, 4  ;;  %s449_s3 = int_to_ptr.vmem [resolvable:$true] %s448_s3 }
  0x2a   :  { %480 = vmatpush3.msra.mxu1 %v106_v2  ;;  %110 = vmatpush1.msra.mxu0 %v104_v3  ;;  %v98_v9 = vld [vmem:[#allocation5 + $0x138] sm:$0xff]  ;;  %v96_v10 = vld [vmem:[#allocation5 + $0x128] sm:$0xff]  ;;  %v97_v11 = vld [vmem:[#allocation5 + $0x130] sm:$0xff]  ;;  %s585_s10 = scalar_lea.vmem %s449_s3, 16  ;;  %s589_s11 = scalar_lea.vmem %s449_s3, 32 }
  0x2b   :  { %481 = vmatprep.subr.mxu1 %v638_v0  ;;  %111 = vmatprep.subr.mxu0 %v102_v4  ;;  %v95_v12 = vld [vmem:[#allocation5 + $0x120] sm:$0xff]  ;;  %v93_v13 = vld [vmem:[#allocation5 + $0x110] sm:$0xff]  ;;  %v94_v14 = vld [vmem:[#allocation5 + $0x118] sm:$0xff]  ;;  %p586_p1 = scmp.ne.s32.totalorder %s449_s3, %s585_s10  ;;  %p590_p2 = scmp.lt.s32.totalorder %s449_s3, %s449_s3 }
  0x2c   :  { %482 = vmatpush3.msra.mxu1 %v103_v5  ;;  %112 = vmatpush1.msra.mxu0 %v101_v6  ;;  %v92_v15 = vld [vmem:[#allocation5 + $0x108] sm:$0xff]  ;;  %v90_v16 = vld [vmem:[#allocation5 + $0xf8] sm:$0xff]  ;;  %v91_v17 = vld [vmem:[#allocation5 + $0x100] sm:$0xff]  ;;  %p591_p3 = scmp.lt.s32.totalorder %s589_s11, %s585_s10 }
  0x2d   :  { %483 = vmatprep.subr.mxu1 %v638_v0  ;;  %113 = vmatprep.subr.mxu0 %v99_v7  ;;  %v89_v18 = vld [vmem:[#allocation5 + $0xf0] sm:$0xff]  ;;  %v87_v19 = vld [vmem:[#allocation5 + $0xe0] sm:$0xff]  ;;  %v88_v20 = vld [vmem:[#allocation5 + $0xe8] sm:$0xff] }
  0x2e   :  { %484 = vmatpush3.msra.mxu1 %v100_v8  ;;  %114 = vmatpush1.msra.mxu0 %v98_v9  ;;  %v86_v21 = vld [vmem:[#allocation5 + $0xd8] sm:$0xff]  ;;  %v84_v22 = vld [vmem:[#allocation5 + $0xc8] sm:$0xff]  ;;  %v85_v23 = vld [vmem:[#allocation5 + $0xd0] sm:$0xff]  ;;  %p592_p4 = por %p591_p3, %p590_p2 }
  0x2f   :  { %485 = vmatprep.subr.mxu1 %v638_v0  ;;  %115 = vmatprep.subr.mxu0 %v96_v10  ;;  %v83_v24 = vld [vmem:[#allocation5 + $0xc0] sm:$0xff]  ;;  %v81_v25 = vld [vmem:[#allocation5 + $0xb0] sm:$0xff]  ;;  %v82_v26 = vld [vmem:[#allocation5 + $0xb8] sm:$0xff] }
  0x30   :  { %486 = vmatpush3.msra.mxu1 %v97_v11  ;;  %116 = vmatpush1.msra.mxu0 %v95_v12  ;;  %v80_v27 = vld [vmem:[#allocation5 + $0xa8] sm:$0xff]  ;;  %v78_v28 = vld [vmem:[#allocation5 + $0x98] sm:$0xff]  ;;  %v79_v29 = vld [vmem:[#allocation5 + $0xa0] sm:$0xff]  ;;  %p593_p5 = pnand %p592_p4, %p586_p1 }
  0x31   :  { %487 = vmatprep.subr.mxu1 %v638_v0  ;;  %117 = vmatprep.subr.mxu0 %v93_v13  ;;  %v77_v30 = vld [vmem:[#allocation5 + $0x90] sm:$0xff]  ;;  %v75_v31 = vld [vmem:[#allocation5 + $0x80] sm:$0xff]  ;;  %v76_v32 = vld [vmem:[#allocation5 + $0x88] sm:$0xff] }
  0x32   :  { %488 = vmatpush3.msra.mxu1 %v94_v14  ;;  %118 = vmatpush1.msra.mxu0 %v92_v15  ;;  %v74_v33 = vld [vmem:[#allocation5 + $0x78] sm:$0xff]  ;;  %v72_v34 = vld [vmem:[#allocation5 + $0x68] sm:$0xff]  ;;  %v73_v35 = vld [vmem:[#allocation5 + $0x70] sm:$0xff] }
  0x33   :  { %489 = vmatprep.subr.mxu1 %v638_v0  ;;  %119 = vmatprep.subr.mxu0 %v90_v16  ;;  %v71_v36 = vld [vmem:[#allocation5 + $0x60] sm:$0xff]  ;;  %v69_v37 = vld [vmem:[#allocation5 + $0x50] sm:$0xff]  ;;  %v70_v38 = vld [vmem:[#allocation5 + $0x58] sm:$0xff] }
  0x34   :  { %490 = vmatpush3.msra.mxu1 %v91_v17  ;;  %120 = vmatpush1.msra.mxu0 %v89_v18  ;;  %v68_v39 = vld [vmem:[#allocation5 + $0x48] sm:$0xff]  ;;  %v66_v40 = vld [vmem:[#allocation5 + $0x38] sm:$0xff]  ;;  %v67_v41 = vld [vmem:[#allocation5 + $0x40] sm:$0xff] }
  0x35   :  { %491 = vmatprep.subr.mxu1 %v638_v0  ;;  %121 = vmatprep.subr.mxu0 %v87_v19  ;;  %v65_v42 = vld [vmem:[#allocation5 + $0x30] sm:$0xff]  ;;  %v63_v43 = vld [vmem:[#allocation5 + $0x20] sm:$0xff]  ;;  %v64_v44 = vld [vmem:[#allocation5 + $0x28] sm:$0xff] }
  0x36   :  { %492 = vmatpush3.msra.mxu1 %v88_v20  ;;  %122 = vmatpush1.msra.mxu0 %v86_v21  ;;  %v62_v45 = vld [vmem:[#allocation5 + $0x18] sm:$0xff]  ;;  %v60_v46 = vld [vmem:[#allocation5 + $0x8] sm:$0xff]  ;;  %v61_v47 = vld [vmem:[#allocation5 + $0x10] sm:$0xff] }
  0x37   :  { %493 = vmatprep.subr.mxu1 %v638_v0  ;;  %123 = vmatprep.subr.mxu0 %v84_v22  ;;  %v59_v48 = vld [vmem:[#allocation5] sm:$0xff]  ;;  %v58_v49 = vld [vmem:[#allocation2] sm:$0xff] }
  0x38   :  { %494 = vmatpush3.msra.mxu1 %v85_v23  ;;  %124 = vmatpush1.msra.mxu0 %v83_v24  ;;  %v108_v50 = vld [vmem:[#allocation7] sm:$0x7] }
  0x39   :  { %495 = vmatprep.subr.mxu1 %v638_v0  ;;  %125 = vmatprep.subr.mxu0 %v81_v25  ;;  %v423_v51 = vand.u32 2147483647, %v108_v50 }
  0x3a   :  { %496 = vmatpush3.msra.mxu1 %v82_v26  ;;  %126 = vmatpush1.msra.mxu0 %v80_v27 }
  0x3b   :  { %497 = vmatprep.subr.mxu1 %v638_v0  ;;  %127 = vmatprep.subr.mxu0 %v78_v28  ;;  %v424_v52 = vsel %vm342_vm1, %v423_v51, 0.0 }
  0x3c   :  { %498 = vmatpush3.msra.mxu1 %v79_v29  ;;  %128 = vmatpush1.msra.mxu0 %v77_v30  ;;  %v425_v53 = vrot.slane %v424_v52, 4 }
  0x3d   :  { %499 = vmatprep.subr.mxu1 %v638_v0  ;;  %129 = vmatprep.subr.mxu0 %v75_v31 }
  0x3e   :  { %500 = vmatpush3.msra.mxu1 %v76_v32  ;;  %130 = vmatpush1.msra.mxu0 %v74_v33  ;;  %v426_v54 = vadd.f32 %v425_v53, %v424_v52 }
  0x3f   :  { %501 = vmatprep.subr.mxu1 %v638_v0  ;;  %131 = vmatprep.subr.mxu0 %v72_v34 }
  0x40   :  { %502 = vmatpush3.msra.mxu1 %v73_v35  ;;  %132 = vmatpush1.msra.mxu0 %v71_v36  ;;  %v427_v55 = vrot.slane %v426_v54, 2 }
  0x41   :  { %503 = vmatprep.subr.mxu1 %v638_v0  ;;  %133 = vmatprep.subr.mxu0 %v69_v37 }
  0x42   :  { %504 = vmatpush3.msra.mxu1 %v70_v38  ;;  %134 = vmatpush1.msra.mxu0 %v68_v39  ;;  %v428_v56 = vadd.f32 %v427_v55, %v426_v54 }
  0x43   :  { %505 = vmatprep.subr.mxu1 %v638_v0  ;;  %135 = vmatprep.subr.mxu0 %v66_v40 }
  0x44   :  { %506 = vmatpush3.msra.mxu1 %v67_v41  ;;  %136 = vmatpush1.msra.mxu0 %v65_v42  ;;  %v429_v57 = vrot.slane %v428_v56, 1 }
  0x45   :  { %507 = vmatprep.subr.mxu1 %v638_v0  ;;  %137 = vmatprep.subr.mxu0 %v63_v43 }
  0x46   :  { %508 = vmatpush3.msra.mxu1 %v64_v44  ;;  %138 = vmatpush1.msra.mxu0 %v62_v45  ;;  %v430_v58 = vadd.f32 %v429_v57, %v428_v56 }
  0x47   :  { %509 = vmatprep.subr.mxu1 %v638_v0  ;;  %139 = vmatprep.subr.mxu0 %v60_v46 }
  0x48   :  { %510 = vmatpush3.msra.mxu1 %v61_v47  ;;  %140 = vmatpush1.msra.mxu0 %v59_v48  ;;  %431 = vst [vmem:[#allocation9] sm:$0x1] %v430_v58 }
  0x49   :  { %512 = vmatmul.mubr.f32.vlgmr.msra.gmra.mxu1 %v58_v49  ;;  %174 = vmatmul.mubr.f32.vlgmr.msra.gmra.mxu0 %v58_v49 }
  0x4a   :  { %596 = shalt.err (!%p593_p5)
}
  0x4b   :  { %451 = dma.vmem_to_hbm [thread:$0]  %s449_s3, 16, %s730_s5, [#allocation10]   ;;  %v251_v59 = vlaneseq  ;;  %v107_v62 = vld [vmem:[%s727_s2] sm:$0x7]  ;;  %v641_v1 = vmov 1983009808  }
  0x4c   :  { %v278_v2 = vunpack.c.l.s4 %v641_v1  ;;  %v642_v9 = vmov 1934713408   ;;  %vm407_vm2 = vcmask 1041409   ;;  %vm409_vm3 = vcmask 1042434   ;;  %s643_s2 = smov [#allocation8]  }
  0x4d   :  { %v252_v60 = vshrl.u32 %v251_v59, 7  ;;  %v309_v10 = vunpack.c.l.s4 %v642_v9  ;;  %vm411_vm4 = vcmask 1043459   ;;  %vm413_vm5 = vcmask 1044484   ;;  %s438_s5 = sshll.u32 %s643_s2, 4  ;;  %s439_s5 = int_to_ptr.vmem [resolvable:$true] %s438_s5 }
  0x4e   :  { %v279_v7 = vunpack.c.0.s8 %v278_v2  ;;  %vm415_vm6 = vcmask 1045509   ;;  %vm417_vm7 = vcmask 1046534   ;;  %vm419_vm8 = vcmask 1047559   ;;  %s605_s16 = scalar_lea.vmem %s439_s5, 128  ;;  %p610_p7 = scmp.lt.s32.totalorder %s439_s5, %s439_s5 }
  0x4f   :  { %v261_v61 = vsub.s32 2, %v252_v60  ;;  %v253_v63 = vsub.s32 0, %v252_v60  ;;  %v257_v3 = vsub.s32 1, %v252_v60  ;;  %v310_v20 = vunpack.c.0.s8 %v309_v10  ;;  %p606_p6 = scmp.ne.s32.totalorder %s439_s5, %s605_s16  ;;  %p611_p8 = scmp.lt.s32.totalorder %s605_s16, %s605_s16 }
  0x50   :  { %v282_v18 = vsub.s32 %v279_v7, %v252_v60 }
  0x51   :  { %v262_v4 = vrot.slane %v107_v62, %v261_v61  ;;  %v254_v5 = vrot.slane %v107_v62, %v253_v63  ;;  %v258_v8 = vrot.slane %v107_v62, %v257_v3  ;;  %v313_v27 = vsub.s32 %v310_v20, %v252_v60  ;;  %p612_p9 = por %p611_p8, %p610_p7 }
  0x53   :  { %p613_p10 = pnand %p612_p9, %p606_p6 }
 0x109   :  { %v246_v6 = vpop.f32.mrf.mxu1  ;;  %v175_v12 = vpop.f32.mrf.mxu0 }
 0x10a   :  { %v268_v11 = vsub.f32 %v246_v6, %v262_v4  ;;  %v266_v13 = vsub.f32 %v175_v12, %v254_v5 }
 0x10b   :  { %v513_v14 = vpop.f32.mrf.mxu1  ;;  %v177_v16 = vpop.f32.mrf.mxu0 }
 0x10c   :  { %v271_v15 = vmul.f32 %v268_v11, %v268_v11  ;;  %v269_v17 = vmul.f32 %v266_v13, %v266_v13  ;;  %v267_v19 = vsub.f32 %v177_v16, %v258_v8 }
 0x10e   :  { %v275_v21 = vcombine.low %v269_v17, %v271_v15  ;;  %v276_v22 = vcombine.high %v269_v17, %v271_v15  ;;  %v270_v23 = vmul.f32 %v267_v19, %v267_v19 }
 0x110   :  { %v283_v24 = vrot.slane %v275_v21, %v282_v18  ;;  %v291_v25 = vcombine.high %v270_v23, %v638_v0  ;;  %v298_v26 = vrot.slane %v270_v23, %v282_v18  ;;  %v290_v28 = vrot.slane %v276_v22, %v282_v18 }
 0x112   :  { %v305_v29 = vrot.slane %v291_v25, %v282_v18  ;;  %v306_v30 = vcombine.low %v283_v24, %v298_v26  ;;  %v307_v31 = vcombine.high %v283_v24, %v298_v26 }
 0x114   :  { %v314_v32 = vrot.slane %v306_v30, %v313_v27  ;;  %v321_v33 = vrot.slane %v307_v31, %v313_v27  ;;  %v322_v34 = vcombine.low %v290_v28, %v305_v29  ;;  %v323_v35 = vcombine.high %v290_v28, %v305_v29 }
 0x116   :  { %v330_v36 = vrot.slane %v322_v34, %v313_v27  ;;  %v337_v37 = vrot.slane %v323_v35, %v313_v27  ;;  %v338_v38 = vcombine.high %v314_v32, %v638_v0  ;;  %v339_v39 = vcombine.high %v321_v33, %v638_v0 }
 0x117   :  { %v343_v40 = vsel %vm342_vm1, %v314_v32, 0.0  ;;  %v357_v41 = vsel %vm342_vm1, %v321_v33, 0.0 }
 0x118   :  { %v340_v42 = vcombine.high %v330_v36, %v638_v0  ;;  %v341_v43 = vcombine.high %v337_v37, %v638_v0  ;;  %v344_v44 = vrot.slane %v343_v40, 4  ;;  %v350_v45 = vsel %vm342_vm1, %v338_v38, 0.0 }
 0x119   :  { %v351_v46 = vrot.slane %v350_v45, 4  ;;  %v358_v47 = vrot.slane %v357_v41, 4  ;;  %v364_v48 = vsel %vm342_vm1, %v339_v39, 0.0  ;;  %v371_v49 = vsel %vm342_vm1, %v330_v36, 0.0 }
 0x11a   :  { %v345_v50 = vadd.f32 %v344_v44, %v343_v40  ;;  %v365_v51 = vrot.slane %v364_v48, 4  ;;  %v372_v52 = vrot.slane %v371_v49, 4  ;;  %v378_v53 = vsel %vm342_vm1, %v340_v42, 0.0 }
 0x11b   :  { %v352_v54 = vadd.f32 %v351_v46, %v350_v45  ;;  %v359_v55 = vadd.f32 %v358_v47, %v357_v41  ;;  %v379_v56 = vrot.slane %v378_v53, 4  ;;  %v385_v0 = vsel %vm342_vm1, %v337_v37, 0.0 }
 0x11c   :  { %v346_v57 = vrot.slane %v345_v50, 2  ;;  %v366_v58 = vadd.f32 %v365_v51, %v364_v48  ;;  %v373_v59 = vadd.f32 %v372_v52, %v371_v49  ;;  %v386_v60 = vrot.slane %v385_v0, 4 }
 0x11d   :  { %v353_v61 = vrot.slane %v352_v54, 2  ;;  %v360_v62 = vrot.slane %v359_v55, 2  ;;  %v380_v63 = vadd.f32 %v379_v56, %v378_v53  ;;  %v392_v1 = vsel %vm342_vm1, %v341_v43, 0.0 }
 0x11e   :  { %v347_v2 = vadd.f32 %v346_v57, %v345_v50  ;;  %v367_v3 = vrot.slane %v366_v58, 2  ;;  %v374_v4 = vrot.slane %v373_v59, 2  ;;  %v387_v5 = vadd.f32 %v386_v60, %v385_v0 }
 0x11f   :  { %v354_v6 = vadd.f32 %v353_v61, %v352_v54  ;;  %v361_v7 = vadd.f32 %v360_v62, %v359_v55  ;;  %v381_v8 = vrot.slane %v380_v63, 2  ;;  %v393_v9 = vrot.slane %v392_v1, 4 }
 0x120   :  { %v348_v10 = vrot.slane %v347_v2, 1  ;;  %v368_v11 = vadd.f32 %v367_v3, %v366_v58  ;;  %v375_v12 = vadd.f32 %v374_v4, %v373_v59  ;;  %v388_v13 = vrot.slane %v387_v5, 2 }
 0x121   :  { %v355_v14 = vrot.slane %v354_v6, 1  ;;  %v362_v15 = vrot.slane %v361_v7, 1  ;;  %v382_v16 = vadd.f32 %v381_v8, %v380_v63  ;;  %v394_v17 = vadd.f32 %v393_v9, %v392_v1 }
 0x122   :  { %v369_v18 = vrot.slane %v368_v11, 1  ;;  %v376_v19 = vrot.slane %v375_v12, 1  ;;  %v389_v20 = vadd.f32 %v388_v13, %v387_v5  ;;  %v349_v21 = vadd.f32 %v348_v10, %v347_v2 }
 0x123   :  { %v356_v22 = vadd.f32 %v355_v14, %v354_v6  ;;  %v383_v23 = vrot.slane %v382_v16, 1  ;;  %v395_v24 = vrot.slane %v394_v17, 2  ;;  %v363_v25 = vadd.f32 %v362_v15, %v361_v7 }
 0x124   :  { %v390_v26 = vrot.slane %v389_v20, 1  ;;  %v370_v27 = vadd.f32 %v369_v18, %v368_v11  ;;  %v377_v30 = vadd.f32 %v376_v19, %v375_v12 }
 0x125   :  { %v396_v28 = vadd.f32 %v395_v24, %v394_v17  ;;  %v408_v29 = vsel %vm407_vm2, %v356_v22, %v349_v21  ;;  %v384_v32 = vadd.f32 %v383_v23, %v382_v16 }
 0x126   :  { %v410_v31 = vsel %vm409_vm3, %v363_v25, %v408_v29  ;;  %v391_v35 = vadd.f32 %v390_v26, %v389_v20 }
 0x127   :  { %v397_v33 = vrot.slane %v396_v28, 1  ;;  %v412_v34 = vsel %vm411_vm4, %v370_v27, %v410_v31 }
 0x128   :  { %v414_v36 = vsel %vm413_vm5, %v377_v30, %v412_v34 }
 0x129   :  { %v398_v37 = vadd.f32 %v397_v33, %v396_v28  ;;  %v416_v38 = vsel %vm415_vm6, %v384_v32, %v414_v36 }
 0x12a   :  { %v418_v39 = vsel %vm417_vm7, %v391_v35, %v416_v38 }
 0x12b   :  { %v420_v40 = vsel %vm419_vm8, %v398_v37, %v418_v39 }
 0x12c   :  { %422 = vst [vmem:[#allocation8] sm:$0xff] %v420_v40 }
 0x12d   :  { %616 = shalt.err (!%p613_p10)
}
 0x12e   :  { %441 = dma.vmem_to_hbm [thread:$0]  %s439_s5, 128, %s729_s4, [#allocation4]  }
 0x12f   :  { %629 = dma.done.wait [#allocation4], 128  }
 0x130   :  { %630 = vsyncadd [#allocation4], 4294967168 }
 0x131   :  { %631 = dma.done.wait [#allocation10], 16  }
 0x132   :  { %632 = vsyncadd [#allocation10], 4294967280 }
 0x133   :  { %458 = vsyncpa [#allocation3], 1 }
 0x134   :  { %459 = vsyncpa [#allocation6], 1 }
 0x135   :  { %460 = vsyncpa [#allocation4], 1 }
 0x136   :  { %461 = vsyncpa [#allocation10], 1 }

</bundles_post_ra>
